<compile_context>
chip_gen: v6e
topology: v6e:2x2x1
jax: 0.10.0
libtpu: 0.0.40
codegen_flags: <defaults>
</compile_context>

<pallas_src>
import functools
import math

import jax
import jax.numpy as jnp
from jax.experimental import pallas as pl
from jax.experimental.pallas import tpu as pltpu


# ----------------------------------------------------------------------------
# Pallas kernel: one (tm, tn) output tile, accumulating over the K grid axis.
# ----------------------------------------------------------------------------
def _fc_kernel(x_ref, w_ref, b_ref, o_ref, acc_ref):
    k = pl.program_id(2)

    @pl.when(k == 0)
    def _():
        acc_ref[...] = jnp.zeros_like(acc_ref)

    acc_ref[...] += jnp.dot(
        x_ref[...], w_ref[...], preferred_element_type=jnp.float32
    )

    @pl.when(k == pl.num_programs(2) - 1)
    def _():
        # bias add fused into the epilogue of the matmul (no separate kernel)
        o_ref[...] = (acc_ref[...] + b_ref[...]).astype(o_ref.dtype)


# ----------------------------------------------------------------------------
# Wrapper
# ----------------------------------------------------------------------------
def _choose_tile(dim, candidates):
    """Largest candidate tile that evenly divides `dim`; else the full dim."""
    for c in candidates:
        if dim >= c and dim % c == 0:
            return c
    return dim


def linear(x2d, w, b):
    M, K = x2d.shape
    Kw, N = w.shape
    assert K == Kw, (K, Kw)

    # 256-aligned tiles preferred (v6e/v7x MXU is 2x256x256); fall back to the
    # full dimension for small shapes so blocks always satisfy (8,128) rules.
    tm = _choose_tile(M, (512, 256, 128, 8))
    tn = _choose_tile(N, (512, 256, 128))
    tk = _choose_tile(K, (512, 256, 128))
    grid = (M // tm, N // tn, K // tk)

    return pl.pallas_call(
        _fc_kernel,
        out_shape=jax.ShapeDtypeStruct((M, N), x2d.dtype),
        grid=grid,
        in_specs=[
            pl.BlockSpec((tm, tk), lambda i, j, k: (i, k)),
            pl.BlockSpec((tk, tn), lambda i, j, k: (k, j)),
            pl.BlockSpec((1, tn), lambda i, j, k: (0, j)),
        ],
        out_specs=pl.BlockSpec((tm, tn), lambda i, j, k: (i, j)),
        scratch_shapes=[pltpu.VMEM((tm, tn), jnp.float32)],
        compiler_params=pltpu.CompilerParams(
            dimension_semantics=("parallel", "parallel", "arbitrary")
        ),
    )(x2d, w, b.reshape(1, N))


def sees_decoder_forward(params, src):
    # src: [B, seq_len, hid_dim] -> flatten -> FC
    B = src.shape[0]
    x2d = src.reshape(B, -1)
    return linear(x2d, params["w"], params["b"])


# ----------------------------------------------------------------------------
# Deterministic parameter init (PyTorch nn.Linear-style uniform init).
# Weight stored as (in_dim, out_dim) so forward is x @ W + b (== x @ W_pt.T + b).
# ----------------------------------------------------------------------------
def init_params(key, hid_dim, seq_len, out_dim):
    din = hid_dim * seq_len
    kw, kb = jax.random.split(key)
    bound = 1.0 / math.sqrt(din)
    w = jax.random.uniform(kw, (din, out_dim), jnp.float32, -bound, bound)
    b = jax.random.uniform(kb, (out_dim,), jnp.float32, -bound, bound)
    return {"w": w, "b": b}


# ----------------------------------------------------------------------------
# Demo
# ----------------------------------------------------------------------------
if __name__ == "__main__":
    HID_DIM = 32
    SEQ_LEN = 8
    OUT_DIM = 64
    B = 2

    root = jax.random.PRNGKey(0)
    k_param, k_src = jax.random.split(root)

    params = init_params(k_param, HID_DIM, SEQ_LEN, OUT_DIM)
    src = jax.random.normal(k_src, (B, SEQ_LEN, HID_DIM), jnp.float32)

    fwd = jax.jit(sees_decoder_forward)
    out = fwd(params, src)
    jax.block_until_ready(out)

    # Pure-JAX reference check of the forward semantics.
    ref = src.reshape(B, SEQ_LEN * HID_DIM) @ params["w"] + params["b"]
    assert out.shape == (B, OUT_DIM)
    assert jnp.allclose(out, ref, atol=1e-5, rtol=1e-5)
    print("KERNEL_OK")
</pallas_src>

<mosaic_0001>
module attributes {stable_mosaic.version = 11 : i64} {
  func.func @_fc_kernel(%arg0: i32, %arg1: i32, %arg2: i32, %arg3: memref<2x256xf32, #tpu.memory_space<vmem>>, %arg4: memref<256x64xf32, #tpu.memory_space<vmem>>, %arg5: memref<1x64xf32, #tpu.memory_space<vmem>>, %arg6: memref<2x64xf32, #tpu.memory_space<vmem>>, %arg7: memref<2x64xf32, #tpu.memory_space<vmem>>) attributes {dimension_semantics = [#tpu.dimension_semantics<parallel>, #tpu.dimension_semantics<parallel>, #tpu.dimension_semantics<arbitrary>], iteration_bounds = array<i64: 1, 1, 1>, scalar_prefetch = 0 : i64, scratch_operands = 1 : i64, tpu.core_type = #tpu.core_type<tc>, window_params = [{transform_indices = @transform_0, window_bounds = array<i64: 2, 256>}, {transform_indices = @transform_1, window_bounds = array<i64: 256, 64>}, {transform_indices = @transform_2, window_bounds = array<i64: 1, 64>}, {transform_indices = @transform_3, window_bounds = array<i64: 2, 64>}]} {
    %c0_i32 = arith.constant 0 : i32
    %0 = arith.cmpi eq, %arg2, %c0_i32 : i32
    %1 = arith.extui %0 : i1 to i32
    %c0_i32_0 = arith.constant 0 : i32
    %2 = arith.cmpi ne, %1, %c0_i32_0 : i32
    scf.if %2 {
      %cst_10 = arith.constant 0.000000e+00 : f32
      %12 = vector.broadcast %cst_10 : f32 to vector<2x64xf32>
      %c0_11 = arith.constant 0 : index
      %c0_12 = arith.constant 0 : index
      %13 = vector.load %arg7[%c0_11, %c0_12] : memref<2x64xf32, #tpu.memory_space<vmem>>, vector<2x64xf32>
      tpu.vector_store %arg7[%c0_11, %c0_12], %12 {strides = array<i32>} : memref<2x64xf32, #tpu.memory_space<vmem>>, vector<2x64xf32>,
    } else {
    }
    %c0 = arith.constant 0 : index
    %c0_1 = arith.constant 0 : index
    %3 = vector.load %arg7[%c0, %c0_1] : memref<2x64xf32, #tpu.memory_space<vmem>>, vector<2x64xf32>
    %c0_2 = arith.constant 0 : index
    %c0_3 = arith.constant 0 : index
    %4 = vector.load %arg3[%c0_2, %c0_3] : memref<2x256xf32, #tpu.memory_space<vmem>>, vector<2x256xf32>
    %c0_4 = arith.constant 0 : index
    %c0_5 = arith.constant 0 : index
    %5 = vector.load %arg4[%c0_4, %c0_5] : memref<256x64xf32, #tpu.memory_space<vmem>>, vector<256x64xf32>
    %cst = arith.constant dense<0.000000e+00> : vector<2x64xf32>
    %6 = tpu.matmul %4, %5, %cst {dimension_numbers = #tpu.dot_dimension_numbers<[1], [0], [0], [1], [0, 0, 1, 1], [], []>} : vector<2x256xf32>, vector<256x64xf32>, vector<2x64xf32> -> vector<2x64xf32>
    %7 = arith.addf %3, %6 : vector<2x64xf32>
    %c0_6 = arith.constant 0 : index
    %c0_7 = arith.constant 0 : index
    %8 = vector.load %arg7[%c0_6, %c0_7] : memref<2x64xf32, #tpu.memory_space<vmem>>, vector<2x64xf32>
    tpu.vector_store %arg7[%c0_6, %c0_7], %7 {strides = array<i32>} : memref<2x64xf32, #tpu.memory_space<vmem>>, vector<2x64xf32>,
    %c0_i32_8 = arith.constant 0 : i32
    %9 = arith.cmpi eq, %arg2, %c0_i32_8 : i32
    %10 = arith.extui %9 : i1 to i32
    %c0_i32_9 = arith.constant 0 : i32
    %11 = arith.cmpi ne, %10, %c0_i32_9 : i32
    scf.if %11 {
      %c0_10 = arith.constant 0 : index
      %c0_11 = arith.constant 0 : index
      %12 = vector.load %arg7[%c0_10, %c0_11] : memref<2x64xf32, #tpu.memory_space<vmem>>, vector<2x64xf32>
      %c0_12 = arith.constant 0 : index
      %c0_13 = arith.constant 0 : index
      %13 = vector.load %arg5[%c0_12, %c0_13] : memref<1x64xf32, #tpu.memory_space<vmem>>, vector<1x64xf32>
      %14 = vector.broadcast %13 : vector<1x64xf32> to vector<2x64xf32>
      %15 = arith.addf %12, %14 : vector<2x64xf32>
      %c0_14 = arith.constant 0 : index
      %c0_15 = arith.constant 0 : index
      %16 = vector.load %arg6[%c0_14, %c0_15] : memref<2x64xf32, #tpu.memory_space<vmem>>, vector<2x64xf32>
      tpu.vector_store %arg6[%c0_14, %c0_15], %15 {strides = array<i32>} : memref<2x64xf32, #tpu.memory_space<vmem>>, vector<2x64xf32>,
    } else {
    }
    return
  }
  func.func @transform_0(%arg0: i32, %arg1: i32, %arg2: i32) -> (i32, i32) {
    %c0_i32 = arith.constant 0 : i32
    return %arg0, %arg2 : i32, i32
  }
  func.func @transform_1(%arg0: i32, %arg1: i32, %arg2: i32) -> (i32, i32) {
    %c0_i32 = arith.constant 0 : i32
    return %arg2, %arg1 : i32, i32
  }
  func.func @transform_2(%arg0: i32, %arg1: i32, %arg2: i32) -> (i32, i32) {
    %c0_i32 = arith.constant 0 : i32
    %c0_i32_0 = arith.constant 0 : i32
    return %c0_i32, %arg1 : i32, i32
  }
  func.func @transform_3(%arg0: i32, %arg1: i32, %arg2: i32) -> (i32, i32) {
    %c0_i32 = arith.constant 0 : i32
    return %arg0, %arg1 : i32, i32
  }
}

</mosaic_0001>

<bundles_post_ra>
// kernel: sees_decoder_forward.1
= control target key start
LH: loop header
LB: loop body
LE: loop exit
PB: predicated region body
PF: predicated region fallthrough
CT: control target
= control target key end

     0   :  { %s354_s0 = inlined_call_operand.vmem [shape: f32[2,256], index: 0, kind: input, shape index: {}]   ;;  %s355_s1 = inlined_call_operand.vmem [shape: f32[256,64], index: 1, kind: input, shape index: {}]   ;;  %s356_s2 = inlined_call_operand.vmem [shape: f32[1,64], index: 2, kind: input, shape index: {}]   ;;  %s357_s3 = inlined_call_operand.hbm [shape: f32[2,64], index: 3, kind: output, shape index: {}]  }
   0x1   :  { %v54_v0 = vld [vmem:[%s355_s1 + $0xf8] sm:$0xff]  ;;  %v53_v2 = vld [vmem:[%s355_s1 + $0xf0] sm:$0xff]  ;;  %v52_v4 = vld [vmem:[%s355_s1 + $0xe8] sm:$0xff] }
   0x2   :  { %v38_v1 = vld [vmem:[%s355_s1 + $0x78] sm:$0xff]  ;;  %168 = vmatprep.subr.mxu0 %v54_v0  ;;  %v37_v3 = vld [vmem:[%s355_s1 + $0x70] sm:$0xff]  ;;  %v36_v5 = vld [vmem:[%s355_s1 + $0x68] sm:$0xff] }
   0x3   :  { %169 = vmatpush3.msra.mxu0 %v38_v1  ;;  %v51_v6 = vld [vmem:[%s355_s1 + $0xe0] sm:$0xff]  ;;  %v50_v8 = vld [vmem:[%s355_s1 + $0xd8] sm:$0xff]  ;;  %v49_v10 = vld [vmem:[%s355_s1 + $0xd0] sm:$0xff] }
   0x4   :  { %170 = vmatprep.subr.mxu0 %v53_v2  ;;  %v35_v7 = vld [vmem:[%s355_s1 + $0x60] sm:$0xff]  ;;  %v34_v9 = vld [vmem:[%s355_s1 + $0x58] sm:$0xff]  ;;  %v33_v11 = vld [vmem:[%s355_s1 + $0x50] sm:$0xff] }
   0x5   :  { %171 = vmatpush3.msra.mxu0 %v37_v3  ;;  %v48_v12 = vld [vmem:[%s355_s1 + $0xc8] sm:$0xff]  ;;  %v166_v13 = vld.sshfl [vmem:[%s354_s0] sm:$0x33 pattern:$0x76325410] }
   0x6   :  { %172 = vmatprep.subr.mxu0 %v52_v4  ;;  %v32_v14 = vld [vmem:[%s355_s1 + $0x48] sm:$0xff]  ;;  %v63_v15 = vcombine.high %v166_v13, %v166_v13 }
   0x7   :  { %173 = vmatpush3.msra.mxu0 %v36_v5 }
   0x8   :  { %174 = vmatprep.subr.mxu0 %v51_v6 }
   0x9   :  { %175 = vmatpush3.msra.mxu0 %v35_v7 }
   0xa   :  { %176 = vmatprep.subr.mxu0 %v50_v8 }
   0xb   :  { %177 = vmatpush3.msra.mxu0 %v34_v9 }
   0xc   :  { %178 = vmatprep.subr.mxu0 %v49_v10 }
   0xd   :  { %8 = vsyncpa [#allocation4], 0  ;;  %179 = vmatpush3.msra.mxu0 %v33_v11  ;;  %v47_v16 = vld [vmem:[%s355_s1 + $0xc0] sm:$0xff]  ;;  %130 = vmatprep.mubr.f32.mxu0 %v63_v15  ;;  %v46_v18 = vld [vmem:[%s355_s1 + $0xb8] sm:$0xff]  ;;  %vm19_vm0 = vcmask 517120   ;;  %v227_v34 = vmov 0.0  }
   0xe   :  { %180 = vmatprep.subr.mxu0 %v48_v12  ;;  %v31_v17 = vld [vmem:[%s355_s1 + $0x40] sm:$0xff]  ;;  %v30_v19 = vld [vmem:[%s355_s1 + $0x38] sm:$0xff]  ;;  %v45_v20 = vld [vmem:[%s355_s1 + $0xb0] sm:$0xff]  ;;  %20 = vst.msk [vmem:[#allocation2] sm:$0x3] %vm19_vm0, %v227_v34  ;;  %s228_s24 = smov [#allocation3]  }
   0xf   :  { %181 = vmatpush3.msra.mxu0 %v32_v14  ;;  %v29_v21 = vld [vmem:[%s355_s1 + $0x30] sm:$0xff]  ;;  %v44_v22 = vld [vmem:[%s355_s1 + $0xa8] sm:$0xff]  ;;  %v43_v24 = vld [vmem:[%s355_s1 + $0xa0] sm:$0xff]  ;;  %s158_s25 = sshll.u32 %s228_s24, 4  ;;  %s159_s25 = int_to_ptr.vmem [resolvable:$true] %s158_s25 }
  0x10   :  { %182 = vmatprep.subr.mxu0 %v47_v16  ;;  %v28_v23 = vld [vmem:[%s355_s1 + $0x28] sm:$0xff]  ;;  %v27_v25 = vld [vmem:[%s355_s1 + $0x20] sm:$0xff]  ;;  %v42_v26 = vld [vmem:[%s355_s1 + $0x98] sm:$0xff]  ;;  %p210_p1 = scmp.lt.s32.totalorder %s159_s25, %s159_s25 }
  0x11   :  { %183 = vmatpush3.msra.mxu0 %v31_v17  ;;  %v26_v27 = vld [vmem:[%s355_s1 + $0x18] sm:$0xff]  ;;  %v41_v28 = vld [vmem:[%s355_s1 + $0x90] sm:$0xff]  ;;  %v40_v30 = vld [vmem:[%s355_s1 + $0x88] sm:$0xff] }
  0x12   :  { %184 = vmatprep.subr.mxu0 %v46_v18  ;;  %v25_v29 = vld [vmem:[%s355_s1 + $0x10] sm:$0xff]  ;;  %v24_v31 = vld [vmem:[%s355_s1 + $0x8] sm:$0xff]  ;;  %v39_v32 = vld [vmem:[%s355_s1 + $0x80] sm:$0xff] }
  0x13   :  { %185 = vmatpush3.msra.mxu0 %v30_v19  ;;  %v23_v33 = vld [vmem:[%s355_s1] sm:$0xff]  ;;  %s205_s1 = scalar_lea.vmem %s159_s25, 32 }
  0x14   :  { %186 = vmatprep.subr.mxu0 %v45_v20  ;;  %v167_v40 = vld [vmem:[%s356_s2] ss:$0 sm:$0xff]  ;;  %p206_p0 = scmp.ne.s32.totalorder %s159_s25, %s205_s1  ;;  %p211_p2 = scmp.lt.s32.totalorder %s205_s1, %s205_s1 }
  0x15   :  { %187 = vmatpush3.msra.mxu0 %v29_v21  ;;  %v21_v36 = vld [vmem:[#allocation2] sm:$0x3] }
  0x16   :  { %188 = vmatprep.subr.mxu0 %v44_v22  ;;  %p212_p3 = por %p211_p2, %p210_p1 }
  0x17   :  { %189 = vmatpush3.msra.mxu0 %v28_v23 }
  0x18   :  { %190 = vmatprep.subr.mxu0 %v43_v24  ;;  %p213_p4 = pnand %p212_p3, %p206_p0 }
  0x19   :  { %191 = vmatpush3.msra.mxu0 %v27_v25 }
  0x1a   :  { %192 = vmatprep.subr.mxu0 %v42_v26 }
  0x1b   :  { %193 = vmatpush3.msra.mxu0 %v26_v27 }
  0x1c   :  { %194 = vmatprep.subr.mxu0 %v41_v28 }
  0x1d   :  { %195 = vmatpush3.msra.mxu0 %v25_v29 }
  0x1e   :  { %196 = vmatprep.subr.mxu0 %v40_v30 }
  0x1f   :  { %197 = vmatpush3.msra.mxu0 %v24_v31 }
  0x20   :  { %198 = vmatprep.subr.mxu0 %v39_v32 }
  0x21   :  { %199 = vmatpush3.msra.mxu0 %v23_v33 }
  0x22   :  { %131 = vmatmul.mubr.f32.vlgmr.msra.gmra.mxu0 %v166_v13 }
  0xe2   :  { %v200_v35 = vpop.f32.mrf.mxu0 }
  0xe4   :  { %v201_v37 = vpop.f32.mrf.mxu0 }
  0xe5   :  { %v202_v38 = vadd.f32 %v201_v37, %v200_v35 }
  0xe7   :  { %v136_v39 = vadd.f32 %v202_v38, %v21_v36 }
  0xe9   :  { %138 = vst.msk [vmem:[#allocation2] sm:$0x3] %vm19_vm0, %v136_v39 }
  0xf0   :  { %v142_v41 = vld [vmem:[#allocation2] sm:$0x3] }
  0xf1   :  { %v150_v42 = vadd.f32 %v167_v40, %v142_v41 }
  0xf3   :  { %151 = vst.msk [vmem:[#allocation3] sm:$0x3] %vm19_vm0, %v150_v42 }
  0xf4   :  { %216 = shalt.err (!%p213_p4)
}
  0xf5   :  { %161 = dma.vmem_to_hbm [thread:$0]  %s159_s25, 32, %s357_s3, [#allocation4]  }
  0xf6   :  { %225 = dma.done.wait [#allocation4], 32  }
  0xf7   :  { %226 = vsyncadd [#allocation4], 4294967264 }
  0xf8   :  { %165 = vsyncpa [#allocation4], 1 }

</bundles_post_ra>
